<compile_context>
chip_gen: v6e
topology: v6e:2x2x1
jax: 0.10.0
libtpu: 0.0.40
codegen_flags: <defaults>
</compile_context>

<pallas_src>
import jax
import jax.numpy as jnp
from jax.experimental import pallas as pl
from jax.experimental.pallas import tpu as pltpu

NUM_EDGE_FEATURES = 4
_VMEM = pl.BlockSpec(memory_space=pltpu.MemorySpace.VMEM)
_NEG_INF = -1e30


# ----------------------------- Pallas kernel ------------------------------- #

def _gdp_fused_kernel(x_ref, bias1_ref, bias2_ref,
                      w1_ref, as1_ref, ad1_ref, b1_ref,
                      w2_ref, as2_ref, ad2_ref, b2_ref,
                      wl_ref, bl_ref, out_ref):
    """Fused GATConv -> ReLU -> GATConv -> Linear -> ReLU.

    x_ref:      (N, Fin)  node features
    bias*_ref:  (N, N)    att_edge . lin_edge(e_ij) + (-1e30 on non-edges);
                          rows = destination, cols = source (self loops incl.)
    w*_ref:     (Fin, C) / (C, C)  lin weights (transposed PyG layout)
    as*_ref:    (1, C)    att_src
    ad*_ref:    (C, 1)    att_dst
    b*_ref:     (1, C)    GATConv bias
    wl_ref:     (C, T), bl_ref: (1, T)  final Linear
    out_ref:    (N, T)
    """

    def gat(x, bias, w, att_src, att_dst, b, apply_relu):
        # Projection on the MXU (bf16 operands, f32 accumulation).
        h = jnp.dot(x.astype(jnp.bfloat16), w.astype(jnp.bfloat16),
                    preferred_element_type=jnp.float32)              # (N, C)
        a_dst = jnp.dot(h, att_dst, preferred_element_type=jnp.float32)   # (N, 1)
        a_src = jnp.dot(att_src, h.T, preferred_element_type=jnp.float32)  # (1, N)

        # logits[i, j] = att_dst.h_i + att_src.h_j + att_edge.lin_edge(e_ij)
        # (non-edges carry -1e30 via `bias`), then leaky_relu(0.2).
        logits = a_dst + a_src + bias
        logits = jnp.where(logits >= 0.0, logits, 0.2 * logits)

        # Unnormalized softmax over sources; masked entries underflow to 0.
        m = jnp.max(logits, axis=1, keepdims=True)
        p = jnp.exp(logits - m)
        s = jnp.sum(p, axis=1, keepdims=True)

        # Aggregate on the MXU, then scale by the EUP reciprocal of the row sum.
        agg = jnp.dot(p.astype(jnp.bfloat16), h.astype(jnp.bfloat16),
                      preferred_element_type=jnp.float32)            # (N, C)
        out = agg * pl.reciprocal(s, approx=True) + b
        if apply_relu:
            out = jnp.maximum(out, 0.0)
        return out

    x = x_ref[...]

    h1 = gat(x, bias1_ref[...], w1_ref[...], as1_ref[...], ad1_ref[...],
             b1_ref[...], apply_relu=True)
    # TODO(synk): F.dropout is treated as eval-mode identity; training-mode
    # dropout would use pltpu.prng_seed / pltpu.prng_random_bits in-kernel.
    h2 = gat(h1, bias2_ref[...], w2_ref[...], as2_ref[...], ad2_ref[...],
             b2_ref[...], apply_relu=False)

    y = jnp.dot(h2, wl_ref[...], preferred_element_type=jnp.float32) + bl_ref[...]
    out_ref[...] = jnp.maximum(y, 0.0)


# ------------------------------ JAX wrappers -------------------------------- #

def densify_graph(edge_index, edge_attr, num_nodes):
    """Edge list -> dense adjacency mask (N, N) + dense edge attrs (N, N, E)."""
    src = edge_index[0]
    dst = edge_index[1]
    e = edge_attr.shape[1]
    # Note: duplicate (dst, src) edges overwrite (last write wins); PyG's sparse
    # softmax would treat parallel edges as separate terms.  Test graph has none.
    adj = jnp.zeros((num_nodes, num_nodes), jnp.float32).at[dst, src].set(1.0)
    ea = jnp.zeros((num_nodes, num_nodes, e),
                   jnp.float32).at[dst, src].set(edge_attr)
    # PyG add_self_loops(fill_value='mean'): self-loop attr = mean of the
    # attributes of edges incoming to that node (0 if it has none).
    sums = jnp.zeros((num_nodes, e), jnp.float32).at[dst].add(edge_attr)
    cnts = jnp.zeros((num_nodes,), jnp.float32).at[dst].add(1.0)
    loop_attr = sums / jnp.maximum(cnts, 1.0)[:, None]
    diag = jnp.arange(num_nodes)
    adj = adj.at[diag, diag].set(1.0)
    ea = ea.at[diag, diag].set(loop_attr)
    return adj, ea


def init_params(key, num_features=3, hidden=32, target=1,
                edge_dim=NUM_EDGE_FEATURES):
    ks = jax.random.split(key, 14)

    def n(k, shape):
        return (0.1 * jax.random.normal(k, shape)).astype(jnp.float32)

    p = {}
    # GATConv layer 1 (num_features -> hidden)
    p["w1"] = n(ks[0], (num_features, hidden))      # lin.weight^T
    p["att_src1"] = n(ks[1], (1, hidden))
    p["att_dst1"] = n(ks[2], (hidden, 1))
    p["w_edge1"] = n(ks[3], (edge_dim, hidden))     # lin_edge.weight^T
    p["att_edge1"] = n(ks[4], (hidden, 1))
    p["b1"] = n(ks[5], (1, hidden))
    # GATConv layer 2 (hidden -> hidden)
    p["w2"] = n(ks[6], (hidden, hidden))
    p["att_src2"] = n(ks[7], (1, hidden))
    p["att_dst2"] = n(ks[8], (hidden, 1))
    p["w_edge2"] = n(ks[9], (edge_dim, hidden))
    p["att_edge2"] = n(ks[10], (hidden, 1))
    p["b2"] = n(ks[11], (1, hidden))
    # final Linear(hidden -> target)
    p["w_lin"] = n(ks[12], (hidden, target))
    p["b_lin"] = n(ks[13], (1, target))
    return p


@jax.jit
def gdp_forward(params, x, edge_index, edge_attr):
    n = x.shape[0]
    t = params["w_lin"].shape[1]

    adj, ea = densify_graph(edge_index, edge_attr, n)
    mask_bias = jnp.where(adj > 0.5, 0.0, _NEG_INF).astype(jnp.float32)

    # Fold lin_edge followed by att_edge into one (E,) vector per layer and
    # contract the dense (N, N, E) edge tensor down to a single (N, N) additive
    # attention bias (plus the -1e30 non-edge mask) in the XLA wrapper.
    w_ea1 = (params["w_edge1"] @ params["att_edge1"])[:, 0]    # (E,)
    w_ea2 = (params["w_edge2"] @ params["att_edge2"])[:, 0]
    bias1 = jnp.tensordot(ea, w_ea1, axes=1) + mask_bias       # (N, N)
    bias2 = jnp.tensordot(ea, w_ea2, axes=1) + mask_bias       # (N, N)

    return pl.pallas_call(
        _gdp_fused_kernel,
        out_shape=jax.ShapeDtypeStruct((n, t), jnp.float32),
        in_specs=[_VMEM] * 13,
        out_specs=_VMEM,
        compiler_params=pltpu.CompilerParams(
            vmem_limit_bytes=32 * 1024 * 1024),
    )(x, bias1, bias2,
      params["w1"], params["att_src1"], params["att_dst1"], params["b1"],
      params["w2"], params["att_src2"], params["att_dst2"], params["b2"],
      params["w_lin"], params["b_lin"])


if __name__ == "__main__":
    key = jax.random.PRNGKey(0)
    k_param, k_x, k_e = jax.random.split(key, 3)

    N = 16            # nodes
    F_IN = 3          # num_features
    params = init_params(k_param, num_features=F_IN, hidden=32, target=1)

    x = jax.random.normal(k_x, (N, F_IN), dtype=jnp.float32)

    # Deterministic bidirectional ring graph (no self loops, no duplicates).
    fwd_src = jnp.arange(N)
    fwd_dst = (jnp.arange(N) + 1) % N
    src = jnp.concatenate([fwd_src, fwd_dst])
    dst = jnp.concatenate([fwd_dst, fwd_src])
    edge_index = jnp.stack([src, dst]).astype(jnp.int32)       # (2, 2N)
    edge_attr = jax.random.normal(k_e, (2 * N, NUM_EDGE_FEATURES),
                                  dtype=jnp.float32)

    out = gdp_forward(params, x, edge_index, edge_attr)
    out = jax.block_until_ready(out)
    assert out.shape == (N, 1) and out.dtype == jnp.float32
    print("KERNEL_OK")
</pallas_src>

<mosaic_0001>
module attributes {stable_mosaic.version = 11 : i64} {
  func.func private @main(%arg0: i32) attributes {dimension_semantics = [#tpu.dimension_semantics<core_parallel>], iteration_bounds = array<i64: 2>, tpu.core_type = #tpu.core_type<sc_scalar_subcore>, window_params = []} {
    return
  }
}

module attributes {stable_mosaic.version = 11 : i64} {
  func.func private @main(%arg0: i32) attributes {dimension_semantics = [#tpu.dimension_semantics<core_parallel>], iteration_bounds = array<i64: 2>, tpu.core_type = #tpu.core_type<sc_scalar_subcore>, window_params = []} {
    return
  }
}

module attributes {stable_mosaic.version = 11 : i64} {
  func.func @_gdp_fused_kernel(%arg0: memref<16x3xf32, #tpu.memory_space<vmem>>, %arg1: memref<16x16xf32, #tpu.memory_space<vmem>>, %arg2: memref<16x16xf32, #tpu.memory_space<vmem>>, %arg3: memref<3x32xf32, #tpu.memory_space<vmem>>, %arg4: memref<1x32xf32, #tpu.memory_space<vmem>>, %arg5: memref<32x1xf32, #tpu.memory_space<vmem>>, %arg6: memref<1x32xf32, #tpu.memory_space<vmem>>, %arg7: memref<32x32xf32, #tpu.memory_space<vmem>>, %arg8: memref<1x32xf32, #tpu.memory_space<vmem>>, %arg9: memref<32x1xf32, #tpu.memory_space<vmem>>, %arg10: memref<1x32xf32, #tpu.memory_space<vmem>>, %arg11: memref<32x1xf32, #tpu.memory_space<vmem>>, %arg12: memref<1x1xf32, #tpu.memory_space<vmem>>, %arg13: memref<16x1xf32, #tpu.memory_space<vmem>>) attributes {dimension_semantics = [], scalar_prefetch = 0 : i64, scratch_operands = 0 : i64, tpu.core_type = #tpu.core_type<tc>} {
    %c0 = arith.constant 0 : index
    %c0_0 = arith.constant 0 : index
    %0 = vector.load %arg0[%c0, %c0_0] : memref<16x3xf32, #tpu.memory_space<vmem>>, vector<16x3xf32>
    %c0_1 = arith.constant 0 : index
    %c0_2 = arith.constant 0 : index
    %1 = vector.load %arg1[%c0_1, %c0_2] : memref<16x16xf32, #tpu.memory_space<vmem>>, vector<16x16xf32>
    %c0_3 = arith.constant 0 : index
    %c0_4 = arith.constant 0 : index
    %2 = vector.load %arg3[%c0_3, %c0_4] : memref<3x32xf32, #tpu.memory_space<vmem>>, vector<3x32xf32>
    %c0_5 = arith.constant 0 : index
    %c0_6 = arith.constant 0 : index
    %3 = vector.load %arg4[%c0_5, %c0_6] : memref<1x32xf32, #tpu.memory_space<vmem>>, vector<1x32xf32>
    %c0_7 = arith.constant 0 : index
    %c0_8 = arith.constant 0 : index
    %4 = vector.load %arg5[%c0_7, %c0_8] : memref<32x1xf32, #tpu.memory_space<vmem>>, vector<32x1xf32>
    %c0_9 = arith.constant 0 : index
    %c0_10 = arith.constant 0 : index
    %5 = vector.load %arg6[%c0_9, %c0_10] : memref<1x32xf32, #tpu.memory_space<vmem>>, vector<1x32xf32>
    %6 = arith.truncf %0 : vector<16x3xf32> to vector<16x3xbf16>
    %7 = arith.truncf %2 : vector<3x32xf32> to vector<3x32xbf16>
    %cst = arith.constant dense<0.000000e+00> : vector<16x32xf32>
    %8 = tpu.matmul %6, %7, %cst {dimension_numbers = #tpu.dot_dimension_numbers<[1], [0], [0], [1], [0, 0, 1, 1], [], []>} : vector<16x3xbf16>, vector<3x32xbf16>, vector<16x32xf32> -> vector<16x32xf32>
    %cst_11 = arith.constant dense<0.000000e+00> : vector<16x1xf32>
    %9 = tpu.matmul %8, %4, %cst_11 {dimension_numbers = #tpu.dot_dimension_numbers<[1], [0], [0], [1], [0, 0, 1, 1], [], []>} : vector<16x32xf32>, vector<32x1xf32>, vector<16x1xf32> -> vector<16x1xf32>
    %10 = tpu.transpose %8, [1, 0] : vector<16x32xf32> -> vector<32x16xf32>
    %cst_12 = arith.constant dense<0.000000e+00> : vector<1x16xf32>
    %11 = tpu.matmul %3, %10, %cst_12 {dimension_numbers = #tpu.dot_dimension_numbers<[1], [0], [0], [1], [0, 0, 1, 1], [], []>} : vector<1x32xf32>, vector<32x16xf32>, vector<1x16xf32> -> vector<1x16xf32>
    %12 = vector.broadcast %9 : vector<16x1xf32> to vector<16x16xf32>
    %13 = vector.broadcast %11 : vector<1x16xf32> to vector<16x16xf32>
    %14 = arith.addf %12, %13 : vector<16x16xf32>
    %15 = arith.addf %14, %1 : vector<16x16xf32>
    %cst_13 = arith.constant 0.000000e+00 : f32
    %16 = vector.broadcast %cst_13 : f32 to vector<16x16xf32>
    %17 = arith.cmpf oge, %15, %16 : vector<16x16xf32>
    %cst_14 = arith.constant 2.000000e-01 : f32
    %18 = vector.broadcast %cst_14 : f32 to vector<16x16xf32>
    %19 = arith.mulf %18, %15 : vector<16x16xf32>
    %20 = arith.select %17, %15, %19 : vector<16x16xi1>, vector<16x16xf32>
    %cst_15 = arith.constant dense<0xFF800000> : vector<16xf32>
    %21 = vector.multi_reduction <maximumf>, %20, %cst_15 [1] : vector<16x16xf32> to vector<16xf32>
    %22 = vector.shape_cast %21 : vector<16xf32> to vector<16x1xf32>
    %23 = vector.broadcast %22 : vector<16x1xf32> to vector<16x16xf32>
    %24 = arith.subf %20, %23 : vector<16x16xf32>
    %25 = math.exp %24 : vector<16x16xf32>
    %cst_16 = arith.constant dense<0.000000e+00> : vector<16xf32>
    %26 = vector.multi_reduction <add>, %25, %cst_16 [1] : vector<16x16xf32> to vector<16xf32>
    %27 = vector.shape_cast %26 : vector<16xf32> to vector<16x1xf32>
    %28 = arith.truncf %25 : vector<16x16xf32> to vector<16x16xbf16>
    %29 = arith.truncf %8 : vector<16x32xf32> to vector<16x32xbf16>
    %cst_17 = arith.constant dense<0.000000e+00> : vector<16x32xf32>
    %30 = tpu.matmul %28, %29, %cst_17 {dimension_numbers = #tpu.dot_dimension_numbers<[1], [0], [0], [1], [0, 0, 1, 1], [], []>} : vector<16x16xbf16>, vector<16x32xbf16>, vector<16x32xf32> -> vector<16x32xf32>
    %31 = tpu.reciprocal %27 {approx = true} : vector<16x1xf32> -> vector<16x1xf32>
    %32 = vector.broadcast %31 : vector<16x1xf32> to vector<16x32xf32>
    %33 = arith.mulf %30, %32 : vector<16x32xf32>
    %34 = vector.broadcast %5 : vector<1x32xf32> to vector<16x32xf32>
    %35 = arith.addf %33, %34 : vector<16x32xf32>
    %cst_18 = arith.constant 0.000000e+00 : f32
    %36 = vector.broadcast %cst_18 : f32 to vector<16x32xf32>
    %37 = arith.maximumf %35, %36 : vector<16x32xf32>
    %c0_19 = arith.constant 0 : index
    %c0_20 = arith.constant 0 : index
    %38 = vector.load %arg2[%c0_19, %c0_20] : memref<16x16xf32, #tpu.memory_space<vmem>>, vector<16x16xf32>
    %c0_21 = arith.constant 0 : index
    %c0_22 = arith.constant 0 : index
    %39 = vector.load %arg7[%c0_21, %c0_22] : memref<32x32xf32, #tpu.memory_space<vmem>>, vector<32x32xf32>
    %c0_23 = arith.constant 0 : index
    %c0_24 = arith.constant 0 : index
    %40 = vector.load %arg8[%c0_23, %c0_24] : memref<1x32xf32, #tpu.memory_space<vmem>>, vector<1x32xf32>
    %c0_25 = arith.constant 0 : index
    %c0_26 = arith.constant 0 : index
    %41 = vector.load %arg9[%c0_25, %c0_26] : memref<32x1xf32, #tpu.memory_space<vmem>>, vector<32x1xf32>
    %c0_27 = arith.constant 0 : index
    %c0_28 = arith.constant 0 : index
    %42 = vector.load %arg10[%c0_27, %c0_28] : memref<1x32xf32, #tpu.memory_space<vmem>>, vector<1x32xf32>
    %43 = arith.truncf %37 : vector<16x32xf32> to vector<16x32xbf16>
    %44 = arith.truncf %39 : vector<32x32xf32> to vector<32x32xbf16>
    %cst_29 = arith.constant dense<0.000000e+00> : vector<16x32xf32>
    %45 = tpu.matmul %43, %44, %cst_29 {dimension_numbers = #tpu.dot_dimension_numbers<[1], [0], [0], [1], [0, 0, 1, 1], [], []>} : vector<16x32xbf16>, vector<32x32xbf16>, vector<16x32xf32> -> vector<16x32xf32>
    %cst_30 = arith.constant dense<0.000000e+00> : vector<16x1xf32>
    %46 = tpu.matmul %45, %41, %cst_30 {dimension_numbers = #tpu.dot_dimension_numbers<[1], [0], [0], [1], [0, 0, 1, 1], [], []>} : vector<16x32xf32>, vector<32x1xf32>, vector<16x1xf32> -> vector<16x1xf32>
    %47 = tpu.transpose %45, [1, 0] : vector<16x32xf32> -> vector<32x16xf32>
    %cst_31 = arith.constant dense<0.000000e+00> : vector<1x16xf32>
    %48 = tpu.matmul %40, %47, %cst_31 {dimension_numbers = #tpu.dot_dimension_numbers<[1], [0], [0], [1], [0, 0, 1, 1], [], []>} : vector<1x32xf32>, vector<32x16xf32>, vector<1x16xf32> -> vector<1x16xf32>
    %49 = vector.broadcast %46 : vector<16x1xf32> to vector<16x16xf32>
    %50 = vector.broadcast %48 : vector<1x16xf32> to vector<16x16xf32>
    %51 = arith.addf %49, %50 : vector<16x16xf32>
    %52 = arith.addf %51, %38 : vector<16x16xf32>
    %cst_32 = arith.constant 0.000000e+00 : f32
    %53 = vector.broadcast %cst_32 : f32 to vector<16x16xf32>
    %54 = arith.cmpf oge, %52, %53 : vector<16x16xf32>
    %cst_33 = arith.constant 2.000000e-01 : f32
    %55 = vector.broadcast %cst_33 : f32 to vector<16x16xf32>
    %56 = arith.mulf %55, %52 : vector<16x16xf32>
    %57 = arith.select %54, %52, %56 : vector<16x16xi1>, vector<16x16xf32>
    %cst_34 = arith.constant dense<0xFF800000> : vector<16xf32>
    %58 = vector.multi_reduction <maximumf>, %57, %cst_34 [1] : vector<16x16xf32> to vector<16xf32>
    %59 = vector.shape_cast %58 : vector<16xf32> to vector<16x1xf32>
    %60 = vector.broadcast %59 : vector<16x1xf32> to vector<16x16xf32>
    %61 = arith.subf %57, %60 : vector<16x16xf32>
    %62 = math.exp %61 : vector<16x16xf32>
    %cst_35 = arith.constant dense<0.000000e+00> : vector<16xf32>
    %63 = vector.multi_reduction <add>, %62, %cst_35 [1] : vector<16x16xf32> to vector<16xf32>
    %64 = vector.shape_cast %63 : vector<16xf32> to vector<16x1xf32>
    %65 = arith.truncf %62 : vector<16x16xf32> to vector<16x16xbf16>
    %66 = arith.truncf %45 : vector<16x32xf32> to vector<16x32xbf16>
    %cst_36 = arith.constant dense<0.000000e+00> : vector<16x32xf32>
    %67 = tpu.matmul %65, %66, %cst_36 {dimension_numbers = #tpu.dot_dimension_numbers<[1], [0], [0], [1], [0, 0, 1, 1], [], []>} : vector<16x16xbf16>, vector<16x32xbf16>, vector<16x32xf32> -> vector<16x32xf32>
    %68 = tpu.reciprocal %64 {approx = true} : vector<16x1xf32> -> vector<16x1xf32>
    %69 = vector.broadcast %68 : vector<16x1xf32> to vector<16x32xf32>
    %70 = arith.mulf %67, %69 : vector<16x32xf32>
    %71 = vector.broadcast %42 : vector<1x32xf32> to vector<16x32xf32>
    %72 = arith.addf %70, %71 : vector<16x32xf32>
    %c0_37 = arith.constant 0 : index
    %c0_38 = arith.constant 0 : index
    %73 = vector.load %arg11[%c0_37, %c0_38] : memref<32x1xf32, #tpu.memory_space<vmem>>, vector<32x1xf32>
    %cst_39 = arith.constant dense<0.000000e+00> : vector<16x1xf32>
    %74 = tpu.matmul %72, %73, %cst_39 {dimension_numbers = #tpu.dot_dimension_numbers<[1], [0], [0], [1], [0, 0, 1, 1], [], []>} : vector<16x32xf32>, vector<32x1xf32>, vector<16x1xf32> -> vector<16x1xf32>
    %c0_40 = arith.constant 0 : index
    %c0_41 = arith.constant 0 : index
    %75 = vector.load %arg12[%c0_40, %c0_41] : memref<1x1xf32, #tpu.memory_space<vmem>>, vector<1x1xf32>
    %76 = vector.broadcast %75 : vector<1x1xf32> to vector<16x1xf32>
    %77 = arith.addf %74, %76 : vector<16x1xf32>
    %cst_42 = arith.constant 0.000000e+00 : f32
    %78 = vector.broadcast %cst_42 : f32 to vector<16x1xf32>
    %79 = arith.maximumf %77, %78 : vector<16x1xf32>
    %c0_43 = arith.constant 0 : index
    %c0_44 = arith.constant 0 : index
    %80 = vector.load %arg13[%c0_43, %c0_44] : memref<16x1xf32, #tpu.memory_space<vmem>>, vector<16x1xf32>
    tpu.vector_store %arg13[%c0_43, %c0_44], %79 {strides = array<i32>} : memref<16x1xf32, #tpu.memory_space<vmem>>, vector<16x1xf32>,
    return
  }
}

</mosaic_0001>

<bundles_post_ra>
// kernel: gdp_forward.1
= control target key start
LH: loop header
LB: loop body
LE: loop exit
PB: predicated region body
PF: predicated region fallthrough
CT: control target
= control target key end

     0   :  { %vm64_vm0 = vcmask 1040384   ;;  %vm65_vm1 = vcmask 1041408   ;;  %v931_v0 = vmov 0.0   ;;  %v932_v2 = vmov 65535   ;;  %s1146_s3 = inlined_call_operand.vmem [shape: f32[3,32], index: 3, kind: input, shape index: {}]   ;;  %s1147_s0 = inlined_call_operand.vmem [shape: f32[16,3], index: 0, kind: input, shape index: {}]   ;;  %s1148_s5 = inlined_call_operand.vmem [shape: f32[32,1], index: 5, kind: input, shape index: {}]   ;;  %s1149_s4 = inlined_call_operand.vmem [shape: f32[1,32], index: 4, kind: input, shape index: {}]   ;;  %s1150_s1 = inlined_call_operand.vmem [shape: f32[16,16], index: 1, kind: input, shape index: {}]   ;;  %s1151_s7 = inlined_call_operand.vmem [shape: f32[32,32], index: 7, kind: input, shape index: {}]   ;;  %s1152_s9 = inlined_call_operand.vmem [shape: f32[32,1], index: 9, kind: input, shape index: {}]   ;;  %s1153_s6 = inlined_call_operand.vmem [shape: f32[1,32], index: 6, kind: input, shape index: {}]   ;;  %s1154_s8 = inlined_call_operand.vmem [shape: f32[1,32], index: 8, kind: input, shape index: {}]   ;;  %s1155_s2 = inlined_call_operand.vmem [shape: f32[16,16], index: 2, kind: input, shape index: {}]   ;;  %s1156_s11 = inlined_call_operand.vmem [shape: f32[32,1], index: 11, kind: input, shape index: {}]   ;;  %s1157_s12 = inlined_call_operand.<no memory space> [shape: f32[1,1], index: 12, kind: input, shape index: {}]   ;;  %s1158_s10 = inlined_call_operand.vmem [shape: f32[1,32], index: 10, kind: input, shape index: {}]   ;;  %s1159_s13 = inlined_call_operand.vmem [shape: f32[16,1], index: 13, kind: output, shape index: {}]  }
   0x1   :  { %836 = vmatprep.subr.bf16.mxu0 %v931_v0  ;;  %v51_v1 = vld [vmem:[%s1146_s3] sm:$0x7]  ;;  %v66_v3 = vsel %vm64_vm0, 4294967295, %v932_v2  ;;  %vm933_vm2 = vmmov 0   ;;  %v48_v7 = vld [vmem:[%s1147_s0 + $0x8] sm:$0xff]  ;;  %v56_v8 = vld [vmem:[%s1148_s5 + $0x18] sm:$0xff]  ;;  %v277_v25 = vlaneseq }
   0x2   :  { %v47_v4 = vld [vmem:[%s1147_s0] sm:$0xff]  ;;  %v59_v5 = vpack.c.bf16 %v51_v1, %v51_v1  ;;  %v67_v6 = vsel %vm65_vm1, %v66_v3, 0  ;;  %838 = vmatprep.mubr.msk.bf16.mxu0 %vm933_vm2, %v931_v0  ;;  %v55_v9 = vld [vmem:[%s1148_s5 + $0x10] sm:$0xff]  ;;  %842 = vmatprep.subr.mxu1 %v56_v8  ;;  %vm60_vm3 = vcmask 23552   ;;  %v54_v12 = vld [vmem:[%s1148_s5 + $0x8] sm:$0xff]  ;;  %vm112_vm4 = vcmask 261120  }
   0x3   :  { %843 = vmatpush3.msra.mxu1 %v56_v8  ;;  %v58_v11 = vpack.c.bf16 %v48_v7, %v47_v4  ;;  %v53_v13 = vld [vmem:[%s1148_s5] sm:$0xff]  ;;  %v934_v20 = vmov 0   ;;  %v1047_v26 = vshrl.u32 %v277_v25, 7  ;;  %v50_v33 = vld [vmem:[%s1150_s1 + $0x8] sm:$0xff]  ;;  %vm291_vm6 = vcmask 130048   ;;  %v374_v54 = vld [vmem:[%s1151_s7 + $0x10] sm:$0xff] }
   0x4   :  { %v69_v10 = vand.u32 %v67_v6, %v59_v5  ;;  %844 = vmatprep.subr.mxu1 %v55_v9  ;;  %v52_v19 = vld [vmem:[%s1149_s4] sm:$0x1]  ;;  %913 = vset.pattern.permute.xlu0 %v934_v20  ;;  %v375_v55 = vld [vmem:[%s1151_s7 + $0x18] sm:$0xff]  ;;  %v373_v58 = vld [vmem:[%s1151_s7 + $0x8] sm:$0xff]  ;;  %vm777_vm10 = vcmask 7168  }
   0x5   :  { %845 = vmatpush3.msra.mxu1 %v55_v9  ;;  %914 = vset.pattern.permute.xlu1 %v934_v20  ;;  %v279_v27 = vsub.s32 0, %v1047_v26  ;;  %v49_v29 = vld [vmem:[%s1150_s1] sm:$0xff]  ;;  %v384_v56 = vpack.c.bf16 %v375_v55, %v374_v54  ;;  %v380_v60 = vld [vmem:[%s1152_s9 + $0x18] sm:$0xff]  ;;  %v379_v61 = vld [vmem:[%s1152_s9 + $0x10] sm:$0xff] }
   0x6   :  { %837 = vmatpush3.bf16.msra.mxu0 %v69_v10  ;;  %846 = vmatprep.subr.mxu1 %v54_v12  ;;  %v372_v57 = vld [vmem:[%s1151_s7] sm:$0xff]  ;;  %v684_v54 = vld [vmem:[%s1156_s11 + $0x8] sm:$0xff] }
   0x7   :  { %853 = vmatprep.subr.mxu0 %v931_v0  ;;  %847 = vmatpush3.msra.mxu1 %v54_v12  ;;  %v383_v59 = vpack.c.bf16 %v373_v58, %v372_v57  ;;  %v791_v4 = vld [vmem:[%s1153_s6] ss:$0 sm:$0xff] }
   0x8   :  { %848 = vmatprep.subr.mxu1 %v53_v13  ;;  %v683_v55 = vld [vmem:[%s1156_s11] sm:$0xff] }
   0x9   :  { %839 = vmatmul.mubr.msk.bf16.vlgmr.msra.gmra.mxu0 %vm60_vm3, %v58_v11  ;;  %849 = vmatpush3.msra.mxu1 %v53_v13 }
   0xa   :  { %857 = vmatprep.mubr.msk.f32.mxu0 %vm933_vm2, %v931_v0  ;;  %860 = vmatprep.subr.bf16.mxu1 %v931_v0 }
  0xc9   :  { %v105_v14 = vpop.f32.mrf.mxu0 }
  0xca   :  { %850 = vmatprep.mubr.msk.f32.mxu1 %vm112_vm4, %v105_v14 }
  0xcb   :  { %v840_v15 = vpop.f32.mrf.mxu0 }
  0xcc   :  { %v378_v15 = vld [vmem:[%s1152_s9 + $0x8] sm:$0xff] }
  0xcd   :  { %v108_v16 = vpop.f32.mrf.mxu0 }
  0xce   :  { %v311_v17 = vpack.c.bf16 %v108_v16, %v105_v14  ;;  %851 = vmatmul.mubr.msk.f32.vlgmr.msra.gmra.mxu1 %vm112_vm4, %v108_v16  ;;  %854 = vmatpush3.xpose.msk.msra.mxu0 %vm112_vm4, %v108_v16  ;;  %v377_v16 = vld [vmem:[%s1152_s9] sm:$0xff] }
  0xcf   :  { %v841_v18 = vpop.f32.mrf.mxu0  ;;  %855 = vmatprep.subr.mxu0 %v931_v0  ;;  %862 = vmatprep.mubr.msk.bf16.mxu1 %vm933_vm2, %v931_v0 }
  0xd0   :  { %861 = vmatpush3.bf16.msra.mxu1 %v311_v17 }
  0xd1   :  { %874 = vmatprep.subr.mxu1 %v380_v60 }
  0xd2   :  { %856 = vmatpush3.xpose.msk.msra.mxu0 %vm112_vm4, %v105_v14 }
  0xd3   :  { %866 = vmatprep.subr.bf16.mxu0 %v931_v0 }
  0xd5   :  { %858 = vmatmul.mubr.msk.f32.vlgmr.msra.gmra.mxu0 %vm112_vm4, %v52_v19 }
  0xd6   :  { %870 = vmatprep.mubr.msk.bf16.mxu0 %vm933_vm2, %v931_v0  ;;  %867 = vmatpush3.bf16.msra.mxu0 %v384_v56  ;;  %v18_v56 = vstv %s1157_s12 }
  0xd7   :  { %868 = vmatprep.subr.bf16.mxu0 %v931_v0  ;;  %19 = vst [vmem:[#allocation2] sm:$0x1] %v18_v56 }
  0xda   :  { %869 = vmatpush3.bf16.msra.mxu0 %v383_v59 }
  0xdb   :  { %885 = vmatprep.subr.mxu0 %v931_v0 }
 0x18e   :  { %v852_v21 = vpop.f32.mrf.mxu1 }
 0x190   :  { %v185_v22 = vpop.f32.mrf.mxu1 }
 0x191   :  { %269 = vperm.xlu0 %913, %v185_v22   ;;  %v376_v22 = vld [vmem:[%s1154_s8] sm:$0x1] }
 0x195   :  { %274 = vperm.xlu0 %913, %v852_v21   ;;  %v263_v23 = vpop.f32.mrf.mxu0 }
 0x196   :  { %v280_v28 = vrot.slane %v263_v23, %v279_v27 }
 0x197   :  { %v859_v24 = vpop.f32.mrf.mxu0 }
 0x20c   :  { %v270_v30 = vpop.permute.xlu0 %269 }
 0x20d   :  { %v281_v31 = vadd.f32 %v280_v28, %v270_v30 }
 0x20f   :  { %v283_v32 = vadd.f32 %v281_v31, %v49_v29 }
 0x210   :  { %v275_v34 = vpop.permute.xlu0 %274 }
 0x211   :  { %v282_v35 = vadd.f32 %v280_v28, %v275_v34  ;;  %vm285_vm5 = vcmp.ge.f32.partialorder %v283_v32, 0.0  ;;  %v287_v36 = vmul.f32 0.2, %v283_v32 }
 0x213   :  { %v284_v37 = vadd.f32 %v282_v35, %v50_v33  ;;  %v289_v38 = vsel %vm285_vm5, %v283_v32, %v287_v36  ;;  %v371_v33 = vld [vmem:[%s1155_s2 + $0x8] sm:$0xff] }
 0x214   :  { %v292_v39 = vsel %vm291_vm6, %v289_v38, -inf }
 0x215   :  { %293 = vmax.xlane.f32.xlu1 %v292_v39  ;;  %vm286_vm7 = vcmp.ge.f32.partialorder %v284_v37, 0.0  ;;  %v288_v40 = vmul.f32 0.2, %v284_v37 }
 0x217   :  { %v290_v41 = vsel %vm286_vm7, %v284_v37, %v288_v40 }
 0x218   :  { %v295_v42 = vsel %vm291_vm6, %v290_v41, -inf }
 0x219   :  { %296 = vmax.xlane.f32.xlu1 %v295_v42 }
 0x29e   :  { %v294_v43 = vpop.xlane.xlu1 %293 }
 0x29f   :  { %v298_v44 = vsub.f32 %v289_v38, %v294_v43 }
 0x2a1   :  { %v300_v45 = vmul.f32 1.442695, %v298_v44 }
 0x2a2   :  { %v297_v46 = vpop.xlane.xlu1 %296 }
 0x2a3   :  { %915 = vpow2.f32 %v300_v45  ;;  %v299_v47 = vsub.f32 %v290_v41, %v297_v46 }
 0x2a5   :  { %v302_v48 = vmul.f32 1.442695, %v299_v47 }
 0x2a7   :  { %917 = vpow2.f32 %v302_v48 }
 0x2b0   :  { %v916_v49 = vpop.eup %915 }
 0x2b1   :  { %v304_v50 = vsel %vm291_vm6, %v916_v49, 0.0 }
 0x2b2   :  { %305 = vadd.xlane.f32.xlu0 %v304_v50 }
 0x2b4   :  { %v918_v51 = vpop.eup %917 }
 0x2b5   :  { %v307_v52 = vsel %vm291_vm6, %v918_v51, 0.0  ;;  %v310_v53 = vpack.c.bf16 %v918_v51, %v916_v49 }
 0x2b6   :  { %308 = vadd.xlane.f32.xlu1 %v307_v52  ;;  %v686_v52 = vld [vmem:[%s1156_s11 + $0x18] sm:$0xff] }
 0x2b7   :  { %863 = vmatmul.mubr.msk.bf16.vlgmr.msra.gmra.mxu1 %vm291_vm6, %v310_v53  ;;  %v685_v53 = vld [vmem:[%s1156_s11 + $0x10] sm:$0xff] }
 0x2b8   :  { %875 = vmatpush3.msra.mxu1 %v380_v60  ;;  %v799_v60 = vld [vmem:[%s1158_s10] ss:$0 sm:$0xff] }
 0x2b9   :  { %876 = vmatprep.subr.mxu1 %v379_v61 }
 0x2ba   :  { %877 = vmatpush3.msra.mxu1 %v379_v61 }
 0x2bb   :  { %878 = vmatprep.subr.mxu1 %v378_v15 }
 0x2bc   :  { %879 = vmatpush3.msra.mxu1 %v378_v15 }
 0x2bd   :  { %880 = vmatprep.subr.mxu1 %v377_v16 }
 0x2be   :  { %881 = vmatpush3.msra.mxu1 %v377_v16 }
 0x2bf   :  { %892 = vmatprep.subr.bf16.mxu1 %v931_v0 }
 0x33b   :  { %v306_v62 = vpop.xlane.xlu0 %305 }
 0x33c   :  { %919 = vrcp.f32 %v306_v62 }
 0x33f   :  { %v309_v63 = vpop.xlane.xlu1 %308 }
 0x340   :  { %921 = vrcp.f32 %v309_v63 }
 0x349   :  { %v920_v1 = vpop.eup %919 }
 0x34d   :  { %v922_v6 = vpop.eup %921 }
 0x377   :  { %v349_v2 = vpop.f32.mrf.mxu1 }
 0x378   :  { %v358_v3 = vmul.f32 %v920_v1, %v349_v2 }
 0x379   :  { %v864_v5 = vpop.f32.mrf.mxu1 }
 0x37a   :  { %v366_v8 = vadd.f32 %v791_v4, %v358_v3 }
 0x37b   :  { %v352_v7 = vpop.f32.mrf.mxu1 }
 0x37c   :  { %v359_v9 = vmul.f32 %v922_v6, %v352_v7  ;;  %v368_v12 = vmax.f32 %v366_v8, 0.0  ;;  %v800_v7 = vld [vmem:[#allocation2] ss:$0 sm:$0xff] }
 0x37d   :  { %v865_v10 = vpop.f32.mrf.mxu1 }
 0x37e   :  { %v367_v11 = vadd.f32 %v791_v4, %v359_v9 }
 0x380   :  { %v369_v13 = vmax.f32 %v367_v11, 0.0 }
 0x382   :  { %v382_v14 = vpack.c.bf16 %v369_v13, %v368_v12 }
 0x384   :  { %871 = vmatmul.mubr.msk.bf16.vlgmr.msra.gmra.mxu0 %vm112_vm4, %v382_v14 }
 0x385   :  { %889 = vmatprep.mubr.msk.f32.mxu0 %vm933_vm2, %v931_v0 }
 0x444   :  { %v422_v17 = vpop.f32.mrf.mxu0 }
 0x445   :  { %882 = vmatprep.mubr.msk.f32.mxu1 %vm112_vm4, %v422_v17 }
 0x446   :  { %v872_v18 = vpop.f32.mrf.mxu0 }
 0x448   :  { %v425_v19 = vpop.f32.mrf.mxu0 }
 0x449   :  { %v626_v20 = vpack.c.bf16 %v425_v19, %v422_v17  ;;  %883 = vmatmul.mubr.msk.f32.vlgmr.msra.gmra.mxu1 %vm112_vm4, %v425_v19  ;;  %886 = vmatpush3.xpose.msk.msra.mxu0 %vm112_vm4, %v425_v19 }
 0x44a   :  { %v873_v21 = vpop.f32.mrf.mxu0  ;;  %887 = vmatprep.subr.mxu0 %v931_v0  ;;  %894 = vmatprep.mubr.msk.bf16.mxu1 %vm933_vm2, %v931_v0  ;;  %v370_v0 = vld [vmem:[%s1155_s2] sm:$0xff] }
 0x44b   :  { %893 = vmatpush3.bf16.msra.mxu1 %v626_v20 }
 0x44c   :  { %898 = vmatprep.subr.mxu1 %v686_v52 }
 0x44d   :  { %888 = vmatpush3.xpose.msk.msra.mxu0 %vm112_vm4, %v422_v17 }
 0x450   :  { %890 = vmatmul.mubr.msk.f32.vlgmr.msra.gmra.mxu0 %vm112_vm4, %v376_v22 }
 0x509   :  { %v884_v23 = vpop.f32.mrf.mxu1 }
 0x50b   :  { %v501_v24 = vpop.f32.mrf.mxu1 }
 0x50c   :  { %585 = vperm.xlu1 %914, %v501_v24  }
 0x510   :  { %590 = vperm.xlu1 %914, %v884_v23   ;;  %v579_v25 = vpop.f32.mrf.mxu0 }
 0x511   :  { %v596_v29 = vrot.slane %v579_v25, %v279_v27 }
 0x512   :  { %v891_v28 = vpop.f32.mrf.mxu0 }
 0x587   :  { %v586_v30 = vpop.permute.xlu1 %585 }
 0x588   :  { %v597_v31 = vadd.f32 %v596_v29, %v586_v30 }
 0x58a   :  { %v599_v32 = vadd.f32 %v597_v31, %v370_v0 }
 0x58b   :  { %v591_v34 = vpop.permute.xlu1 %590 }
 0x58c   :  { %v598_v35 = vadd.f32 %v596_v29, %v591_v34  ;;  %vm601_vm8 = vcmp.ge.f32.partialorder %v599_v32, 0.0  ;;  %v603_v36 = vmul.f32 0.2, %v599_v32 }
 0x58e   :  { %v600_v37 = vadd.f32 %v598_v35, %v371_v33  ;;  %v605_v38 = vsel %vm601_vm8, %v599_v32, %v603_v36 }
 0x58f   :  { %v607_v26 = vsel %vm291_vm6, %v605_v38, -inf }
 0x590   :  { %608 = vmax.xlane.f32.xlu1 %v607_v26  ;;  %vm602_vm9 = vcmp.ge.f32.partialorder %v600_v37, 0.0  ;;  %v604_v27 = vmul.f32 0.2, %v600_v37 }
 0x592   :  { %v606_v39 = vsel %vm602_vm9, %v600_v37, %v604_v27 }
 0x593   :  { %v610_v40 = vsel %vm291_vm6, %v606_v39, -inf }
 0x594   :  { %611 = vmax.xlane.f32.xlu0 %v610_v40 }
 0x619   :  { %v609_v41 = vpop.xlane.xlu1 %608 }
 0x61a   :  { %v613_v42 = vsub.f32 %v605_v38, %v609_v41 }
 0x61c   :  { %v615_v43 = vmul.f32 1.442695, %v613_v42 }
 0x61d   :  { %v612_v44 = vpop.xlane.xlu0 %611 }
 0x61e   :  { %923 = vpow2.f32 %v615_v43  ;;  %v614_v45 = vsub.f32 %v606_v39, %v612_v44 }
 0x620   :  { %v617_v46 = vmul.f32 1.442695, %v614_v45 }
 0x622   :  { %925 = vpow2.f32 %v617_v46 }
 0x62b   :  { %v924_v47 = vpop.eup %923 }
 0x62c   :  { %v619_v48 = vsel %vm291_vm6, %v924_v47, 0.0 }
 0x62d   :  { %620 = vadd.xlane.f32.xlu0 %v619_v48 }
 0x62f   :  { %v926_v49 = vpop.eup %925 }
 0x630   :  { %v622_v50 = vsel %vm291_vm6, %v926_v49, 0.0  ;;  %v625_v51 = vpack.c.bf16 %v926_v49, %v924_v47 }
 0x631   :  { %623 = vadd.xlane.f32.xlu0 %v622_v50 }
 0x632   :  { %895 = vmatmul.mubr.msk.bf16.vlgmr.msra.gmra.mxu1 %vm291_vm6, %v625_v51 }
 0x633   :  { %899 = vmatpush3.msra.mxu1 %v686_v52 }
 0x634   :  { %900 = vmatprep.subr.mxu1 %v685_v53 }
 0x635   :  { %901 = vmatpush3.msra.mxu1 %v685_v53 }
 0x636   :  { %902 = vmatprep.subr.mxu1 %v684_v54 }
 0x637   :  { %903 = vmatpush3.msra.mxu1 %v684_v54 }
 0x638   :  { %904 = vmatprep.subr.mxu1 %v683_v55 }
 0x639   :  { %905 = vmatpush3.msra.mxu1 %v683_v55 }
 0x6b6   :  { %v621_v57 = vpop.xlane.xlu0 %620 }
 0x6b7   :  { %927 = vrcp.f32 %v621_v57 }
 0x6ba   :  { %v624_v58 = vpop.xlane.xlu0 %623 }
 0x6bb   :  { %929 = vrcp.f32 %v624_v58 }
 0x6c4   :  { %v928_v59 = vpop.eup %927 }
 0x6c8   :  { %v930_v2 = vpop.eup %929 }
 0x6f2   :  { %v664_v61 = vpop.f32.mrf.mxu1 }
 0x6f3   :  { %v673_v62 = vmul.f32 %v928_v59, %v664_v61 }
 0x6f4   :  { %v896_v63 = vpop.f32.mrf.mxu1 }
 0x6f5   :  { %v681_v1 = vadd.f32 %v799_v60, %v673_v62 }
 0x6f6   :  { %v667_v3 = vpop.f32.mrf.mxu1 }
 0x6f7   :  { %v674_v4 = vmul.f32 %v930_v2, %v667_v3  ;;  %906 = vmatprep.mubr.msk.f32.mxu1 %vm112_vm4, %v681_v1 }
 0x6f8   :  { %v897_v5 = vpop.f32.mrf.mxu1 }
 0x6f9   :  { %v682_v6 = vadd.f32 %v799_v60, %v674_v4 }
 0x6fb   :  { %907 = vmatmul.mubr.msk.f32.vlgmr.msra.gmra.mxu1 %vm112_vm4, %v682_v6 }
 0x7bb   :  { %v908_v8 = vpop.f32.mrf.mxu1 }
 0x7bc   :  { %v772_v9 = vadd.f32 %v908_v8, %v800_v7 }
 0x7bd   :  { %v766_v10 = vpop.f32.mrf.mxu1 }
 0x7be   :  { %v776_v11 = vmax.f32 %v772_v9, 0.0  ;;  %v767_v12 = vadd.f32 %v800_v7, %v766_v10 }
 0x7c0   :  { %779 = vst.msk [vmem:[%s1159_s13 + $0x8] sm:$0xff] %vm777_vm10, %v776_v11  ;;  %v775_v13 = vmax.f32 %v767_v12, 0.0 }
 0x7c2   :  { %778 = vst.msk [vmem:[%s1159_s13] sm:$0xff] %vm777_vm10, %v775_v13 }

</bundles_post_ra>
